<compile_context>
chip_gen: v7x
topology: tpu7x:2x2x1
jax: 0.10.0
libtpu: 0.0.40
codegen_flags: <defaults>
</compile_context>

<pallas_src>
import jax
import jax.numpy as jnp
from jax import lax
from jax.experimental import pallas as pl
from jax.experimental.pallas import tpu as pltpu

EPS = 1e-12                      # F.normalize default eps
_LANES = 128                     # lane width of the interleaved input view (OUT==1 path)
_SAMPLES_PER_ROW = _LANES // 2   # 64 samples per 128-lane row

_VMEM_LIMIT = 64 * 1024 * 1024   # explicit scoped-VMEM limit (v5e default is only 16 MiB)
_VMEM_BUDGET = 16 * 1024 * 1024  # what the tiles may actually occupy (v7x-safe, <= 32 MiB)
_STREAM_TARGET = 8 * 1024 * 1024 # ~8 MiB of streamed HBM data per grid step
_MIN_GRID = 8                    # give v7x's two TensorCores something to split


def _round_up(x, m):
    return (x + m - 1) // m * m


def _choose_tile_rows(total_rows, stream_bytes_per_row, vmem_bytes_per_row):
    """Sublane tile size for a 1-D row-blocked grid (Python ints only)."""
    by_stream = max(8, _STREAM_TARGET // max(stream_bytes_per_row, 1))
    by_vmem = max(8, _VMEM_BUDGET // max(vmem_bytes_per_row, 1))
    tile = min(by_stream, by_vmem)
    if total_rows <= tile:
        return total_rows                       # single full-extent block
    tile = min(tile, _round_up(pl.cdiv(total_rows, _MIN_GRID), 8))
    return max(8, (tile // 8) * 8)


# ---------------------------------------------------------------------------
# Path 1: OUT == 1 (the spec case).  Interleaved, lane-dense streaming.
# ---------------------------------------------------------------------------
def _norm_linear_out1_kernel(x_ref, sel_ref, par_ref, o_ref):
    # x_ref  : (TR, 128)  f32, lane-interleaved [x0, x1, x0, x1, ...] (64 samples/row)
    # sel_ref: (128, 128) bf16, 0/1 de-interleave matrix (row 2j -> col j, row 2j+1 -> col 64+j)
    # par_ref: (2, 128)   f32,  row 0 = [w0]*64 ++ [w1]*64, row 1 = bias (broadcast)
    # o_ref  : (TR, 64)   f32,  one output value per sample, natural flat order
    x = x_ref[...]
    sel = sel_ref[...]

    # Exact 3-way bf16 split of x (residual <= 2^-27 rel), so the MXU de-interleave is
    # exact without relying on f32-matmul precision modes.
    hi = x.astype(jnp.bfloat16)
    r1 = x - hi.astype(jnp.float32)
    mid = r1.astype(jnp.bfloat16)
    lo = (r1 - mid.astype(jnp.float32)).astype(jnp.bfloat16)

    d = (jnp.dot(hi, sel, preferred_element_type=jnp.float32)
         + jnp.dot(mid, sel, preferred_element_type=jnp.float32)
         + jnp.dot(lo, sel, preferred_element_type=jnp.float32))     # (TR,128) = [x0 | x1]

    sq = d * d
    sq = sq + pltpu.roll(sq, _SAMPLES_PER_ROW, axis=1)    # x0^2 + x1^2 at every lane
    inv = lax.rsqrt(jnp.maximum(sq, EPS * EPS))           # == 1 / max(||x||, eps)
    wxn = d * inv * par_ref[0:1, :]                       # [w0*x0n | w1*x1n]
    acc = wxn + pltpu.roll(wxn, _SAMPLES_PER_ROW, axis=1)  # w0*x0n + w1*x1n at every lane
    out = acc + par_ref[1:2, :]                           # + bias
    o_ref[...] = out[:, :_SAMPLES_PER_ROW].astype(o_ref.dtype)


def _forward_out1(x, weight, bias):
    n = x.shape[0]
    n_pad = _round_up(n, _SAMPLES_PER_ROW)
    rows = n_pad // _SAMPLES_PER_ROW

    x_flat = x.reshape(-1)                                 # free: (N,2) is contiguous
    if n_pad != n:
        x_flat = jnp.pad(x_flat, (0, 2 * (n_pad - n)))     # zero pad -> out = bias, sliced off
    x2d = x_flat.reshape(rows, _LANES)

    # 0/1 de-interleave matrix (exact in bf16).
    r = jnp.arange(_LANES)
    cols = jnp.where(r % 2 == 0, r // 2, _SAMPLES_PER_ROW + r // 2)
    sel = (jnp.arange(_LANES)[None, :] == cols[:, None]).astype(jnp.bfloat16)

    w0 = weight[0, 0]
    w1 = weight[0, 1]
    wrow = jnp.concatenate([jnp.full((_SAMPLES_PER_ROW,), 1.0, jnp.float32) * w0,
                            jnp.full((_SAMPLES_PER_ROW,), 1.0, jnp.float32) * w1])
    brow = jnp.full((_LANES,), 1.0, jnp.float32) * bias[0]
    params = jnp.stack([wrow, brow])                       # (2, 128)

    stream_per_row = 4 * (_LANES + _SAMPLES_PER_ROW)       # HBM bytes actually moved per row
    vmem_per_row = 2 * 4 * (_LANES + _LANES)               # dbl-buffered; out lane-padded to 128
    tile_rows = _choose_tile_rows(rows, stream_per_row, vmem_per_row)
    grid = (pl.cdiv(rows, tile_rows),)

    cost = pl.CostEstimate(
        flops=rows * _LANES * (6 * _LANES + 16),
        transcendentals=rows * _LANES,
        bytes_accessed=rows * stream_per_row + sel.size * 2 + params.size * 4,
    )

    out2d = pl.pallas_call(
        _norm_linear_out1_kernel,
        out_shape=jax.ShapeDtypeStruct((rows, _SAMPLES_PER_ROW), jnp.float32),
        grid_spec=pltpu.PrefetchScalarGridSpec(
            num_scalar_prefetch=0,
            grid=grid,
            in_specs=[
                pl.BlockSpec((tile_rows, _LANES), lambda i: (i, 0)),   # streamed X view
                pl.BlockSpec((_LANES, _LANES), lambda i: (0, 0)),      # resident selector
                pl.BlockSpec((2, _LANES), lambda i: (0, 0)),           # resident weights/bias
            ],
            out_specs=pl.BlockSpec((tile_rows, _SAMPLES_PER_ROW), lambda i: (i, 0)),
        ),
        compiler_params=pltpu.CompilerParams(
            dimension_semantics=("parallel",),
            vmem_limit_bytes=_VMEM_LIMIT,
        ),
        cost_estimate=cost,
    )(x2d, sel, params)

    return out2d.reshape(-1)[:n].reshape(n, 1)


# ---------------------------------------------------------------------------
# Path 2: OUT >= 2.  Row-blocked, natural layouts, VPU outer-product (no MXU).
# ---------------------------------------------------------------------------
def _norm_linear_rows_kernel(x_ref, w_ref, b_ref, o_ref):
    # x_ref: (TR, 2), w_ref: (2, OUT), b_ref: (1, OUT), o_ref: (TR, OUT)
    x0 = x_ref[:, 0:1]
    x1 = x_ref[:, 1:2]
    inv = lax.rsqrt(jnp.maximum(x0 * x0 + x1 * x1, EPS * EPS))
    xn0 = x0 * inv
    xn1 = x1 * inv
    o_ref[...] = (xn0 * w_ref[0:1, :] + xn1 * w_ref[1:2, :] + b_ref[...]).astype(o_ref.dtype)


def _forward_rows(x, weight, bias):
    n = x.shape[0]
    out_dim = weight.shape[0]
    w_t = weight.T                                        # (2, OUT) lane-dense (tiny)
    b2d = bias.reshape(1, out_dim)

    out_lanes = _round_up(out_dim, _LANES)
    stream_per_row = 8 + 4 * out_dim
    vmem_per_row = 2 * (4 * _LANES + 4 * out_lanes)       # dbl-buffered; both blocks lane-padded
    tile_rows = _choose_tile_rows(n, stream_per_row, vmem_per_row)
    grid = (pl.cdiv(n, tile_rows),)

    cost = pl.CostEstimate(
        flops=n * (8 + 4 * out_dim),
        transcendentals=n,
        bytes_accessed=n * stream_per_row + w_t.size * 4 + b2d.size * 4,
    )

    return pl.pallas_call(
        _norm_linear_rows_kernel,
        out_shape=jax.ShapeDtypeStruct((n, out_dim), jnp.float32),
        grid_spec=pltpu.PrefetchScalarGridSpec(
            num_scalar_prefetch=0,
            grid=grid,
            in_specs=[
                pl.BlockSpec((tile_rows, 2), lambda i: (i, 0)),        # streamed X (natural layout)
                pl.BlockSpec((2, out_dim), lambda i: (0, 0)),          # resident weight (lane-dense)
                pl.BlockSpec((1, out_dim), lambda i: (0, 0)),          # resident bias
            ],
            out_specs=pl.BlockSpec((tile_rows, out_dim), lambda i: (i, 0)),
        ),
        compiler_params=pltpu.CompilerParams(
            dimension_semantics=("parallel",),
            vmem_limit_bytes=_VMEM_LIMIT,
        ),
        cost_estimate=cost,
    )(x, w_t, b2d)


@jax.jit
def normalize_linear(x, weight, bias):
    """x: (N, 2) f32, weight: (OUT, 2) f32, bias: (OUT,) f32 -> (N, OUT) f32."""
    x = x.astype(jnp.float32)
    weight = weight.astype(jnp.float32)
    bias = bias.astype(jnp.float32)
    assert x.ndim == 2 and x.shape[1] == 2, "module is Linear(2, output_dim) on 2-feature input"
    if weight.shape[0] == 1:
        return _forward_out1(x, weight, bias)
    return _forward_rows(x, weight, bias)


class Model:
    """JAX/Pallas port of the PyTorch Model(output_dim)."""

    def __init__(self, output_dim, key):
        in_features = 2
        kw, kb = jax.random.split(key)
        # torch.nn.init.normal_(weight, std=1.0)
        self.weight = jax.random.normal(kw, (output_dim, in_features), dtype=jnp.float32)
        # torch Linear default bias init: U(-1/sqrt(fan_in), 1/sqrt(fan_in))
        bound = 1.0 / jnp.sqrt(jnp.float32(in_features))
        self.bias = jax.random.uniform(
            kb, (output_dim,), dtype=jnp.float32, minval=-bound, maxval=bound
        )

    def __call__(self, X, W):
        # W is unused, matching the reference forward signature.
        return normalize_linear(X, self.weight, self.bias)


if __name__ == "__main__":
    key = jax.random.PRNGKey(0)
    k_param, k_x, k_w, k_x2, k_p2, k_x3 = jax.random.split(key, 6)

    def ref_forward(x, w, b):
        x1 = x / jnp.maximum(jnp.linalg.norm(x, axis=1, keepdims=True), EPS)
        return x1 @ w.T + b

    # 1) Spec case: output_dim = 1, tiny batch.
    model = Model(1, k_param)
    X = jax.random.normal(k_x, (2, 2), dtype=jnp.float32)
    W = jax.random.normal(k_w, (2, 2), dtype=jnp.float32)   # unused by forward
    out = jax.block_until_ready(model(X, W))
    ref = ref_forward(X, model.weight, model.bias)
    assert out.shape == (2, 1), out.shape
    assert jnp.allclose(out, ref, atol=1e-5, rtol=1e-5), (out, ref)

    # 2) output_dim = 1 with a batch that is not a multiple of 64 (padding / tail slicing).
    X2 = jax.random.normal(k_x2, (300, 2), dtype=jnp.float32)
    out2 = jax.block_until_ready(model(X2, W))
    ref2 = ref_forward(X2, model.weight, model.bias)
    assert out2.shape == (300, 1), out2.shape
    assert jnp.allclose(out2, ref2, atol=1e-5, rtol=1e-5)

    # 3) Row-blocked path: larger output_dim (validates the OUT>=2 variant's numerics).
    model128 = Model(128, k_p2)
    X3 = jax.random.normal(k_x3, (96, 2), dtype=jnp.float32)
    out3 = jax.block_until_ready(model128(X3, W))
    ref3 = ref_forward(X3, model128.weight, model128.bias)
    assert out3.shape == (96, 128), out3.shape
    assert jnp.allclose(out3, ref3, atol=1e-5, rtol=1e-5)

    print("KERNEL_OK")
</pallas_src>

<mosaic_0001>
module attributes {stable_mosaic.version = 11 : i64} {
  func.func @_norm_linear_out1_kernel(%arg0: i32, %arg1: memref<1x128xf32, #tpu.memory_space<vmem>>, %arg2: memref<128x128xbf16, #tpu.memory_space<vmem>>, %arg3: memref<2x128xf32, #tpu.memory_space<vmem>>, %arg4: memref<1x64xf32, #tpu.memory_space<vmem>>) attributes {dimension_semantics = [#tpu.dimension_semantics<parallel>], iteration_bounds = array<i64: 1>, scalar_prefetch = 0 : i64, scratch_operands = 0 : i64, tpu.core_type = #tpu.core_type<tc>, window_params = [{transform_indices = @transform_0, window_bounds = array<i64: 1, 128>}, {pipeline_mode = #tpu.pipeline_mode<synchronous>, transform_indices = @transform_1, window_bounds = array<i64: 128, 128>}, {pipeline_mode = #tpu.pipeline_mode<synchronous>, transform_indices = @transform_2, window_bounds = array<i64: 2, 128>}, {transform_indices = @transform_3, window_bounds = array<i64: 1, 64>}]} {
    %c0 = arith.constant 0 : index
    %c0_0 = arith.constant 0 : index
    %0 = vector.load %arg1[%c0, %c0_0] : memref<1x128xf32, #tpu.memory_space<vmem>>, vector<1x128xf32>
    %c0_1 = arith.constant 0 : index
    %c0_2 = arith.constant 0 : index
    %1 = vector.load %arg2[%c0_1, %c0_2] : memref<128x128xbf16, #tpu.memory_space<vmem>>, vector<128x128xbf16>
    %2 = arith.truncf %0 : vector<1x128xf32> to vector<1x128xbf16>
    %3 = arith.extf %2 : vector<1x128xbf16> to vector<1x128xf32>
    %4 = arith.subf %0, %3 : vector<1x128xf32>
    %5 = arith.truncf %4 : vector<1x128xf32> to vector<1x128xbf16>
    %6 = arith.extf %5 : vector<1x128xbf16> to vector<1x128xf32>
    %7 = arith.subf %4, %6 : vector<1x128xf32>
    %8 = arith.truncf %7 : vector<1x128xf32> to vector<1x128xbf16>
    %cst = arith.constant dense<0.000000e+00> : vector<1x128xf32>
    %9 = tpu.matmul %2, %1, %cst {dimension_numbers = #tpu.dot_dimension_numbers<[1], [0], [0], [1], [0, 0, 1, 1], [], []>} : vector<1x128xbf16>, vector<128x128xbf16>, vector<1x128xf32> -> vector<1x128xf32>
    %cst_3 = arith.constant dense<0.000000e+00> : vector<1x128xf32>
    %10 = tpu.matmul %5, %1, %cst_3 {dimension_numbers = #tpu.dot_dimension_numbers<[1], [0], [0], [1], [0, 0, 1, 1], [], []>} : vector<1x128xbf16>, vector<128x128xbf16>, vector<1x128xf32> -> vector<1x128xf32>
    %11 = arith.addf %9, %10 : vector<1x128xf32>
    %cst_4 = arith.constant dense<0.000000e+00> : vector<1x128xf32>
    %12 = tpu.matmul %8, %1, %cst_4 {dimension_numbers = #tpu.dot_dimension_numbers<[1], [0], [0], [1], [0, 0, 1, 1], [], []>} : vector<1x128xbf16>, vector<128x128xbf16>, vector<1x128xf32> -> vector<1x128xf32>
    %13 = arith.addf %11, %12 : vector<1x128xf32>
    %14 = arith.mulf %13, %13 : vector<1x128xf32>
    %c64_i32 = arith.constant 64 : i32
    %15 = tpu.dynamic_rotate %14 by %c64_i32 dim 1 : vector<1x128xf32>, i32 -> vector<1x128xf32>
    %16 = arith.addf %14, %15 : vector<1x128xf32>
    %cst_5 = arith.constant 1.000000e-24 : f32
    %17 = vector.broadcast %cst_5 : f32 to vector<1x128xf32>
    %18 = arith.maximumf %16, %17 : vector<1x128xf32>
    %19 = math.rsqrt %18 : vector<1x128xf32>
    %20 = arith.mulf %13, %19 : vector<1x128xf32>
    %c0_6 = arith.constant 0 : index
    %c0_7 = arith.constant 0 : index
    %21 = vector.load %arg3[%c0_6, %c0_7] : memref<2x128xf32, #tpu.memory_space<vmem>>, vector<1x128xf32>
    %22 = arith.mulf %20, %21 : vector<1x128xf32>
    %c64_i32_8 = arith.constant 64 : i32
    %23 = tpu.dynamic_rotate %22 by %c64_i32_8 dim 1 : vector<1x128xf32>, i32 -> vector<1x128xf32>
    %24 = arith.addf %22, %23 : vector<1x128xf32>
    %c1 = arith.constant 1 : index
    %c0_9 = arith.constant 0 : index
    %25 = vector.load %arg3[%c1, %c0_9] : memref<2x128xf32, #tpu.memory_space<vmem>>, vector<1x128xf32>
    %26 = arith.addf %24, %25 : vector<1x128xf32>
    %27 = vector.extract_strided_slice %26 {offsets = [0, 0], sizes = [1, 64], strides = [1, 1]} : vector<1x128xf32> to vector<1x64xf32>
    %c0_10 = arith.constant 0 : index
    %c0_11 = arith.constant 0 : index
    %28 = vector.load %arg4[%c0_10, %c0_11] : memref<1x64xf32, #tpu.memory_space<vmem>>, vector<1x64xf32>
    tpu.vector_store %arg4[%c0_10, %c0_11], %27 {strides = array<i32>} : memref<1x64xf32, #tpu.memory_space<vmem>>, vector<1x64xf32>,
    return
  }
  func.func @transform_0(%arg0: i32) -> (i32, i32) {
    %c0_i32 = arith.constant 0 : i32
    %c0_i32_0 = arith.constant 0 : i32
    return %arg0, %c0_i32 : i32, i32
  }
  func.func @transform_1(%arg0: i32) -> (i32, i32) {
    %c0_i32 = arith.constant 0 : i32
    %c0_i32_0 = arith.constant 0 : i32
    %c0_i32_1 = arith.constant 0 : i32
    return %c0_i32, %c0_i32_0 : i32, i32
  }
  func.func @transform_2(%arg0: i32) -> (i32, i32) {
    %c0_i32 = arith.constant 0 : i32
    %c0_i32_0 = arith.constant 0 : i32
    %c0_i32_1 = arith.constant 0 : i32
    return %c0_i32, %c0_i32_0 : i32, i32
  }
  func.func @transform_3(%arg0: i32) -> (i32, i32) {
    %c0_i32 = arith.constant 0 : i32
    %c0_i32_0 = arith.constant 0 : i32
    return %arg0, %c0_i32 : i32, i32
  }
}

</mosaic_0001>

<bundles_post_ra>
// kernel: mul.3
= control target key start
LH: loop header
LB: loop body
LE: loop exit
PB: predicated region body
PF: predicated region fallthrough
CT: control target
= control target key end

     0   :  { %s20_s0 = inlined_call_operand.<no memory space> [shape: f32[], index: 0, kind: input, shape index: {}]   ;;  %s21_s1 = inlined_call_operand.vmem [shape: f32[64], index: 1, kind: output, shape index: {}]  }
   0x1   :  { %v2_v0 = vstv %s20_s0 }
   0x2   :  { %3 = vst [vmem:[%s21_s1] sm:$0x1] %v2_v0 }

// kernel: normalize_linear.1
= control target key start
LH: loop header
LB: loop body
LE: loop exit
PB: predicated region body
PF: predicated region fallthrough
CT: control target
= control target key end

     0   :  { %8 = vsyncpa [#allocation3], 0  ;;  %s600_s0 = inlined_call_operand.hbm [shape: f32[1,128], index: 0, kind: input, shape index: {}]   ;;  %s601_s1 = inlined_call_operand.hbm [shape: bf16[128,128], index: 1, kind: input, shape index: {}]   ;;  %s602_s2 = inlined_call_operand.hbm [shape: f32[2,128], index: 2, kind: input, shape index: {}]   ;;  %s603_s3 = inlined_call_operand.hbm [shape: f32[1,64], index: 3, kind: output, shape index: {}]  }
   0x1   :  { %9 = vsyncpa [#allocation6], 0 }
   0x2   :  { %10 = vsyncpa [#allocation4], 0  ;;  %s490_s12 = smov [#allocation5]   ;;  %s396_s16 = scalar_lea.hbm %s601_s1, 1024 }
   0x3   :  { %s26_s13 = sshll.u32 %s490_s12, 4  ;;  %p397_p0 = scmp.ne.s32.totalorder %s601_s1, %s396_s16  ;;  %s27_s13 = int_to_ptr.vmem [resolvable:$true] %s26_s13 }
   0x4   :  { %p400_p1 = scmp.lt.u32.totalorder %s396_s16, %s601_s1 }
   0x6   :  { %p402_p2 = pnand %p400_p1, %p397_p0 }
   0x8   :  { %405 = shalt.err (!%p402_p2)
}
   0x9   :  { %s406_s21 = scalar_lea.vmem %s27_s13, 1024  ;;  %p411_p4 = scmp.lt.s32.totalorder %s27_s13, %s27_s13 }
   0xa   :  { %p407_p3 = scmp.ne.s32.totalorder %s27_s13, %s406_s21  ;;  %p412_p5 = scmp.lt.s32.totalorder %s406_s21, %s406_s21 }
   0xc   :  { %p413_p6 = por %p412_p5, %p411_p4 }
   0xe   :  { %p414_p7 = pnand %p413_p6, %p407_p3 }
  0x10   :  { %417 = shalt.err (!%p414_p7)
}
  0x11   :  { %s491_s22 = smov 64   ;;  %s492_s23 = smov 4  }
  0x12   :  { %32 = dma.hbm_to_vmem [thread:$0]  %s601_s1, 1024, %s27_s13, [#allocation6], %s491_s22, %s491_s22, %s492_s23  }
  0x13   :  { %s493_s26 = smov [#allocation2]   ;;  %s494_s28 = smov [#allocation7]  }
  0x14   :  { %s17_s27 = sshll.u32 %s493_s26, 4  ;;  %s39_s29 = sshll.u32 %s494_s28, 4  ;;  %s18_s27 = int_to_ptr.vmem [resolvable:$true] %s17_s27  ;;  %s40_s29 = int_to_ptr.vmem [resolvable:$true] %s39_s29 }
  0x15   :  { %s418_s5 = scalar_lea.hbm %s600_s0, 16 }
  0x16   :  { %p419_p8 = scmp.ne.s32.totalorder %s600_s0, %s418_s5  ;;  %p422_p9 = scmp.lt.u32.totalorder %s418_s5, %s600_s0 }
  0x18   :  { %p424_p10 = pnand %p422_p9, %p419_p8 }
  0x1a   :  { %427 = shalt.err (!%p424_p10)
}
  0x1b   :  { %s428_s1 = scalar_lea.vmem %s18_s27, 16  ;;  %s432_s10 = scalar_lea.vmem %s18_s27, 32 }
  0x1c   :  { %p429_p11 = scmp.ne.s32.totalorder %s18_s27, %s428_s1  ;;  %p433_p12 = scmp.lt.s32.totalorder %s18_s27, %s18_s27 }
  0x1d   :  { %p434_p13 = scmp.lt.s32.totalorder %s432_s10, %s428_s1 }
  0x1f   :  { %p435_p0 = por %p434_p13, %p433_p12 }
  0x21   :  { %p436_p1 = pnand %p435_p0, %p429_p11 }
  0x23   :  { %439 = shalt.err (!%p436_p1)
}
  0x24   :  { %20 = dma.hbm_to_vmem [thread:$0]  %s600_s0, 16, %s18_s27, [#allocation3]  }
  0x25   :  { %s440_s15 = scalar_lea.hbm %s602_s2, 32 }
  0x26   :  { %p441_p2 = scmp.ne.s32.totalorder %s602_s2, %s440_s15  ;;  %p444_p3 = scmp.lt.u32.totalorder %s440_s15, %s602_s2 }
  0x28   :  { %p446_p4 = pnand %p444_p3, %p441_p2 }
  0x2a   :  { %449 = shalt.err (!%p446_p4)
}
  0x2b   :  { %s450_s20 = scalar_lea.vmem %s40_s29, 32  ;;  %p455_p6 = scmp.lt.s32.totalorder %s40_s29, %s40_s29 }
  0x2c   :  { %p451_p5 = scmp.ne.s32.totalorder %s40_s29, %s450_s20  ;;  %p456_p7 = scmp.lt.s32.totalorder %s450_s20, %s450_s20 }
  0x2e   :  { %p457_p8 = por %p456_p7, %p455_p6 }
  0x30   :  { %p458_p9 = pnand %p457_p8, %p451_p5 }
  0x32   :  { %461 = shalt.err (!%p458_p9)
}
  0x33   :  { %42 = dma.hbm_to_vmem [thread:$0]  %s602_s2, 32, %s40_s29, [#allocation6]  }
  0x34   :  { %484 = dma.done.wait [#allocation3], 16  }
  0x35   :  { %485 = vsyncadd [#allocation3], 4294967280 }
  0x36   :  { %486 = dma.done.wait [#allocation6], 1056  }
  0x37   :  { %487 = vsyncadd [#allocation6], 4294966240  ;;  %v495_v0 = vmov 0.0   ;;  %vm496_vm0 = vmmov 0   ;;  %v386_v1 = vld [vmem:[#allocation5] sm:$0xff]   ;;  %v387_v2 = vld [vmem:[#allocation5 + $0x8] sm:$0xff]  }
  0x38   :  { %333 = vmatprep.subr.bf16.mxu0 %v495_v0  ;;  %313 = vmatprep.subr.bf16.mxu1 %v495_v0  ;;  %v388_v3 = vld [vmem:[#allocation5 + $0x10] sm:$0xff]   ;;  %v389_v4 = vld [vmem:[#allocation5 + $0x18] sm:$0xff]   ;;  %v390_v5 = vld [vmem:[#allocation5 + $0x20] sm:$0xff]   ;;  %s497_s2 = smov [#allocation8]   ;;  %vm260_vm1 = vcmask 516096  }
  0x39   :  { %349 = vmatprep.mubr.msk.bf16.mxu0 %vm496_vm0, %v495_v0  ;;  %329 = vmatprep.mubr.msk.bf16.mxu1 %vm496_vm0, %v495_v0  ;;  %v391_v6 = vld [vmem:[#allocation5 + $0x28] sm:$0xff]   ;;  %v53_v7 = vld [vmem:[#allocation2] sm:$0x1]  ;;  %v392_v9 = vld [vmem:[#allocation5 + $0x30] sm:$0xff]   ;;  %s268_s23 = sshll.u32 %s497_s2, 4  ;;  %s269_s23 = int_to_ptr.vmem [resolvable:$true] %s268_s23 }
  0x3a   :  { %334 = vmatpush3.bf16.msra.mxu0 %v386_v1  ;;  %314 = vmatpush3.bf16.msra.mxu1 %v386_v1  ;;  %v70_v8 = vpack.c.bf16 %v53_v7, %v53_v7  ;;  %v393_v11 = vld [vmem:[#allocation5 + $0x38] sm:$0xff]   ;;  %v253_v31 = vld [vmem:[#allocation7] sm:$0x1]  ;;  %v258_v34 = vld [vmem:[#allocation7 + $0x1] sm:$0x1]  ;;  %s462_s24 = scalar_lea.vmem %s269_s23, 16  ;;  %p467_p11 = scmp.lt.s32.totalorder %s269_s23, %s269_s23 }
  0x3b   :  { %335 = vmatprep.subr.bf16.mxu0 %v495_v0  ;;  %315 = vmatprep.subr.bf16.mxu1 %v495_v0  ;;  %p463_p10 = scmp.ne.s32.totalorder %s269_s23, %s462_s24  ;;  %s466_s25 = scalar_lea.vmem %s269_s23, 32 }
  0x3c   :  { %v71_v10 = vunpack.c.l.bf16 %v70_v8  ;;  %p468_p12 = scmp.lt.s32.totalorder %s466_s25, %s462_s24 }
  0x3e   :  { %336 = vmatpush3.bf16.msra.mxu0 %v387_v2  ;;  %316 = vmatpush3.bf16.msra.mxu1 %v387_v2  ;;  %v72_v12 = vsub.f32 %v53_v7, %v71_v10  ;;  %p469_p13 = por %p468_p12, %p467_p11 }
  0x3f   :  { %337 = vmatprep.subr.bf16.mxu0 %v495_v0  ;;  %317 = vmatprep.subr.bf16.mxu1 %v495_v0 }
  0x40   :  { %v73_v13 = vpack.c.bf16 %v72_v12, %v72_v12  ;;  %p470_p0 = pnand %p469_p13, %p463_p10 }
  0x42   :  { %338 = vmatpush3.bf16.msra.mxu0 %v388_v3  ;;  %318 = vmatpush3.bf16.msra.mxu1 %v388_v3  ;;  %v74_v14 = vunpack.c.l.bf16 %v73_v13 }
  0x43   :  { %339 = vmatprep.subr.bf16.mxu0 %v495_v0  ;;  %319 = vmatprep.subr.bf16.mxu1 %v495_v0 }
  0x44   :  { %v75_v15 = vsub.f32 %v72_v12, %v74_v14 }
  0x46   :  { %340 = vmatpush3.bf16.msra.mxu0 %v389_v4  ;;  %320 = vmatpush3.bf16.msra.mxu1 %v389_v4  ;;  %v76_v16 = vpack.c.bf16 %v75_v15, %v75_v15 }
  0x47   :  { %341 = vmatprep.subr.bf16.mxu0 %v495_v0  ;;  %321 = vmatprep.subr.bf16.mxu1 %v495_v0 }
  0x4a   :  { %342 = vmatpush3.bf16.msra.mxu0 %v390_v5  ;;  %322 = vmatpush3.bf16.msra.mxu1 %v390_v5 }
  0x4b   :  { %343 = vmatprep.subr.bf16.mxu0 %v495_v0  ;;  %323 = vmatprep.subr.bf16.mxu1 %v495_v0 }
  0x4e   :  { %344 = vmatpush3.bf16.msra.mxu0 %v391_v6  ;;  %324 = vmatpush3.bf16.msra.mxu1 %v391_v6 }
  0x4f   :  { %345 = vmatprep.subr.bf16.mxu0 %v495_v0  ;;  %325 = vmatprep.subr.bf16.mxu1 %v495_v0 }
  0x52   :  { %346 = vmatpush3.bf16.msra.mxu0 %v392_v9  ;;  %326 = vmatpush3.bf16.msra.mxu1 %v392_v9 }
  0x53   :  { %347 = vmatprep.subr.bf16.mxu0 %v495_v0  ;;  %327 = vmatprep.subr.bf16.mxu1 %v495_v0 }
  0x56   :  { %348 = vmatpush3.bf16.msra.mxu0 %v393_v11  ;;  %328 = vmatpush3.bf16.msra.mxu1 %v393_v11 }
  0x57   :  { %353 = vmatprep.subr.bf16.mxu0 %v495_v0 }
  0x59   :  { %350 = vmatmul.mubr.bf16.vlgmr.msra.gmra.mrb[0].mxu0 %v70_v8  ;;  %330 = vmatmul.mubr.bf16.vlgmr.msra.gmra.mrb[0].mxu1 %v73_v13 }
  0x5a   :  { %354 = vmatpush3.bf16.msra.mxu0 %v386_v1  ;;  %369 = vmatprep.mubr.msk.bf16.mxu0 %vm496_vm0, %v495_v0 }
  0x5b   :  { %355 = vmatprep.subr.bf16.mxu0 %v495_v0 }
  0x5e   :  { %356 = vmatpush3.bf16.msra.mxu0 %v387_v2 }
  0x5f   :  { %357 = vmatprep.subr.bf16.mxu0 %v495_v0 }
  0x62   :  { %358 = vmatpush3.bf16.msra.mxu0 %v388_v3 }
  0x63   :  { %359 = vmatprep.subr.bf16.mxu0 %v495_v0 }
  0x66   :  { %360 = vmatpush3.bf16.msra.mxu0 %v389_v4 }
  0x67   :  { %361 = vmatprep.subr.bf16.mxu0 %v495_v0 }
  0x6a   :  { %362 = vmatpush3.bf16.msra.mxu0 %v390_v5 }
  0x6b   :  { %363 = vmatprep.subr.bf16.mxu0 %v495_v0 }
  0x6e   :  { %364 = vmatpush3.bf16.msra.mxu0 %v391_v6 }
  0x6f   :  { %365 = vmatprep.subr.bf16.mxu0 %v495_v0 }
  0x72   :  { %366 = vmatpush3.bf16.msra.mxu0 %v392_v9 }
  0x73   :  { %367 = vmatprep.subr.bf16.mxu0 %v495_v0 }
  0x76   :  { %368 = vmatpush3.bf16.msra.mxu0 %v393_v11 }
  0x79   :  { %370 = vmatmul.mubr.bf16.vlgmr.msra.gmra.mrb[0].mxu0 %v76_v16 }
 0x12c   :  { %v159_v17 = vpop.f32.mrb[0].mxu1 }
 0x12d   :  { %v331_v18 = vpop.f32.mrb[1].mxu1 }
 0x12e   :  { %v162_v19 = vpop.f32.mrb[2].mxu1 }
 0x12f   :  { %v332_v20 = vpop.f32.mrb[3].mxu1 }
 0x14c   :  { %v239_v21 = vpop.f32.mrb[0].mxu0 }
 0x14d   :  { %v373_v22 = vadd.f32 %v239_v21, %v159_v17  ;;  %v371_v23 = vpop.f32.mrb[1].mxu0 }
 0x14e   :  { %v242_v24 = vpop.f32.mrb[2].mxu0 }
 0x14f   :  { %v372_v25 = vpop.f32.mrb[3].mxu0  ;;  %v246_v26 = vmul.f32 %v373_v22, %v373_v22 }
 0x151   :  { %247 = vrot.lane.b32.xlu0 %v246_v26, %s491_s22 }
 0x1c3   :  { %v248_v27 = vpop.permute.xlu0 %247 }
 0x1c4   :  { %v249_v28 = vadd.f32 %v248_v27, %v246_v26 }
 0x1c6   :  { %v250_v29 = vmax.f32 %v249_v28, 1e-24 }
 0x1c8   :  { %394 = vrsqrt.f32 %v250_v29 }
 0x1d2   :  { %v395_v30 = vpop.eup %394 }
 0x1d3   :  { %v252_v32 = vmul.f32 %v395_v30, %v373_v22 }
 0x1d5   :  { %v254_v33 = vmul.f32 %v253_v31, %v252_v32 }
 0x1d7   :  { %255 = vrot.lane.b32.xlu0 %v254_v33, %s491_s22 }
 0x249   :  { %v256_v35 = vpop.permute.xlu0 %255 }
 0x24a   :  { %v257_v36 = vadd.f32 %v256_v35, %v254_v33 }
 0x24c   :  { %v259_v37 = vadd.f32 %v258_v34, %v257_v36 }
 0x24e   :  { %261 = vst.msk [vmem:[#allocation8] sm:$0x1] %vm260_vm1, %v259_v37 }
 0x24f   :  { %473 = shalt.err (!%p470_p0)
}
 0x250   :  { %s474_s22 = scalar_lea.hbm %s603_s3, 16 }
 0x251   :  { %p475_p1 = scmp.ne.s32.totalorder %s603_s3, %s474_s22  ;;  %p478_p2 = scmp.lt.u32.totalorder %s474_s22, %s603_s3 }
 0x253   :  { %p480_p3 = pnand %p478_p2, %p475_p1 }
 0x255   :  { %483 = shalt.err (!%p480_p3)
}
 0x256   :  { %271 = dma.vmem_to_hbm [thread:$0]  %s269_s23, 16, %s603_s3, [#allocation4]  }
 0x257   :  { %488 = dma.done.wait [#allocation4], 16  }
 0x258   :  { %489 = vsyncadd [#allocation4], 4294967280 }
 0x259   :  { %275 = vsyncpa [#allocation3], 1 }
 0x25a   :  { %276 = vsyncpa [#allocation6], 1 }
 0x25b   :  { %277 = vsyncpa [#allocation4], 1 }

</bundles_post_ra>
